<compile_context>
chip_gen: v7x
topology: tpu7x:2x2x1
jax: 0.10.0
libtpu: 0.0.40
codegen_flags: <defaults>
</compile_context>

<pallas_src>
import jax
import jax.numpy as jnp
from jax.experimental import pallas as pl
from jax.experimental.pallas import tpu as pltpu


def _cls_rows_copy_kernel(x_ref, o_ref):
    # x_ref / o_ref: (row_blk, blk_n) slab.  Row r = flattened (b, h) pair,
    # lanes [0, blk_n) = first blk_n elements of that head's flattened (N, N)
    # attention map, which contain the full CLS-query row (cols 0..N-1).
    o_ref[...] = x_ref[...]


def part_attention(x):
    """JAX/Pallas equivalent of Part_Attention.forward.

    Args:
      x: list/tuple of per-layer attention maps, each of shape (B, H, N, N).
    Returns:
      (B, H, N-1) array equal to x[-1][:, :, 0, 1:].
    """
    length = len(x)                      # mirrors the PyTorch forward; value unused
    del length
    last = x[-1]
    B, H, N, N2 = last.shape
    assert N == N2, "attention map must be square over tokens"

    BH = B * H
    # Free reshape (merges contiguous dims): each row is one head's (N*N) map.
    flat = last.reshape(BH, N * N)

    # Lane block: smallest multiple of 128 covering the CLS row, capped at full width.
    blk_n = min(N * N, ((N + 127) // 128) * 128)
    # Sublane block: whole BH when small (== full dim, always legal), else an
    # aligned 1024-row chunk so per-step VMEM stays at a few MB.
    row_blk = BH if BH <= 1024 else 1024
    grid = (pl.cdiv(BH, row_blk),)

    rows_out = pl.pallas_call(
        _cls_rows_copy_kernel,
        out_shape=jax.ShapeDtypeStruct((BH, blk_n), last.dtype),
        grid=grid,
        in_specs=[pl.BlockSpec((row_blk, blk_n), lambda i: (i, 0))],
        out_specs=pl.BlockSpec((row_blk, blk_n), lambda i: (i, 0)),
        compiler_params=pltpu.CompilerParams(
            dimension_semantics=("parallel",)),
    )(flat)

    # Drop the CLS->CLS key (col 0) and any alignment tail; cheap XLA slice,
    # reshapes are free.
    return rows_out[:, 1:N].reshape(B, H, N - 1)


if __name__ == "__main__":
    # Small shapes consistent with the DINO ViT attention stack feeding this
    # module: depth=3 layers, batch=2, heads=4, tokens N = 8 patches + 1 CLS.
    B, H, N, DEPTH = 2, 4, 9, 3

    root = jax.random.PRNGKey(0)
    keys = jax.random.split(root, DEPTH)
    # Softmax-normalized maps, like real attention weights.
    attn_maps = [
        jax.nn.softmax(jax.random.normal(k, (B, H, N, N), jnp.float32), axis=-1)
        for k in keys
    ]

    out = part_attention(attn_maps)
    jax.block_until_ready(out)

    ref = attn_maps[-1][:, :, 0, 1:]
    assert out.shape == (B, H, N - 1)
    assert jnp.allclose(out, ref, rtol=1e-6, atol=1e-6), "mismatch vs. reference slice"
    print("KERNEL_OK")
</pallas_src>

<mosaic_0001>
module attributes {stable_mosaic.version = 11 : i64} {
  func.func @_cls_rows_copy_kernel(%arg0: i32, %arg1: memref<8x81xf32, #tpu.memory_space<vmem>>, %arg2: memref<8x81xf32, #tpu.memory_space<vmem>>) attributes {dimension_semantics = [#tpu.dimension_semantics<parallel>], iteration_bounds = array<i64: 1>, scalar_prefetch = 0 : i64, scratch_operands = 0 : i64, tpu.core_type = #tpu.core_type<tc>, window_params = [{transform_indices = @transform_0, window_bounds = array<i64: 8, 81>}, {transform_indices = @transform_1, window_bounds = array<i64: 8, 81>}]} {
    %c0 = arith.constant 0 : index
    %c0_0 = arith.constant 0 : index
    %0 = vector.load %arg1[%c0, %c0_0] : memref<8x81xf32, #tpu.memory_space<vmem>>, vector<8x81xf32>
    %c0_1 = arith.constant 0 : index
    %c0_2 = arith.constant 0 : index
    %1 = vector.load %arg2[%c0_1, %c0_2] : memref<8x81xf32, #tpu.memory_space<vmem>>, vector<8x81xf32>
    tpu.vector_store %arg2[%c0_1, %c0_2], %0 {strides = array<i32>} : memref<8x81xf32, #tpu.memory_space<vmem>>, vector<8x81xf32>,
    return
  }
  func.func @transform_0(%arg0: i32) -> (i32, i32) {
    %c0_i32 = arith.constant 0 : i32
    %c0_i32_0 = arith.constant 0 : i32
    return %arg0, %c0_i32 : i32, i32
  }
  func.func @transform_1(%arg0: i32) -> (i32, i32) {
    %c0_i32 = arith.constant 0 : i32
    %c0_i32_0 = arith.constant 0 : i32
    return %arg0, %c0_i32 : i32, i32
  }
}

</mosaic_0001>

<bundles_post_ra>
// kernel: tpu_custom_call.1
= control target key start
LH: loop header
LB: loop body
LE: loop exit
PB: predicated region body
PF: predicated region fallthrough
CT: control target
= control target key end

     0   :  { %6 = vsyncpa [#allocation3], 0  ;;  %s125_s0 = inlined_call_operand.hbm [shape: f32[8,81], index: 0, kind: input, shape index: {}]   ;;  %s126_s1 = inlined_call_operand.hbm [shape: f32[8,81], index: 1, kind: output, shape index: {}]  }
   0x1   :  { %7 = vsyncpa [#allocation4], 0  ;;  %s89_s6 = smov [#allocation2]   ;;  %s41_s10 = scalar_lea.hbm %s125_s0, 128 }
   0x2   :  { %s14_s7 = sshll.u32 %s89_s6, 4  ;;  %p42_p0 = scmp.ne.s32.totalorder %s125_s0, %s41_s10  ;;  %s15_s7 = int_to_ptr.vmem [resolvable:$true] %s14_s7 }
   0x3   :  { %p45_p1 = scmp.lt.u32.totalorder %s41_s10, %s125_s0 }
   0x5   :  { %p47_p2 = pnand %p45_p1, %p42_p0 }
   0x7   :  { %50 = shalt.err (!%p47_p2)
}
   0x8   :  { %s51_s15 = scalar_lea.vmem %s15_s7, 128  ;;  %p56_p4 = scmp.lt.s32.totalorder %s15_s7, %s15_s7 }
   0x9   :  { %p52_p3 = scmp.ne.s32.totalorder %s15_s7, %s51_s15  ;;  %p57_p5 = scmp.lt.s32.totalorder %s51_s15, %s51_s15 }
   0xb   :  { %p58_p6 = por %p57_p5, %p56_p4 }
   0xd   :  { %p59_p7 = pnand %p58_p6, %p52_p3 }
   0xf   :  { %62 = shalt.err (!%p59_p7)
}
  0x10   :  { %17 = dma.hbm_to_vmem [thread:$0]  %s125_s0, 128, %s15_s7, [#allocation3]  }
  0x11   :  { %85 = dma.done.wait [#allocation3], 128  }
  0x12   :  { %86 = vsyncadd [#allocation3], 4294967168  ;;  %s90_s18 = smov [#allocation5]   ;;  %vm22_vm0 = vcmask 662528   ;;  %v21_v0 = vld [vmem:[#allocation2] sm:$0xff] }
  0x13   :  { %s30_s19 = sshll.u32 %s90_s18, 4  ;;  %23 = vst.msk [vmem:[#allocation5] sm:$0xff] %vm22_vm0, %v21_v0  ;;  %s31_s19 = int_to_ptr.vmem [resolvable:$true] %s30_s19 }
  0x14   :  { %s63_s20 = scalar_lea.vmem %s31_s19, 128  ;;  %p68_p9 = scmp.lt.s32.totalorder %s31_s19, %s31_s19 }
  0x15   :  { %p64_p8 = scmp.ne.s32.totalorder %s31_s19, %s63_s20  ;;  %p69_p10 = scmp.lt.s32.totalorder %s63_s20, %s63_s20 }
  0x17   :  { %p70_p11 = por %p69_p10, %p68_p9 }
  0x19   :  { %p71_p12 = pnand %p70_p11, %p64_p8 }
  0x1b   :  { %74 = shalt.err (!%p71_p12)
}
  0x1c   :  { %s75_s23 = scalar_lea.hbm %s126_s1, 128 }
  0x1d   :  { %p76_p13 = scmp.ne.s32.totalorder %s126_s1, %s75_s23  ;;  %p79_p0 = scmp.lt.u32.totalorder %s75_s23, %s126_s1 }
  0x1f   :  { %p81_p1 = pnand %p79_p0, %p76_p13 }
  0x21   :  { %84 = shalt.err (!%p81_p1)
}
  0x22   :  { %33 = dma.vmem_to_hbm [thread:$0]  %s31_s19, 128, %s126_s1, [#allocation4]  }
  0x23   :  { %87 = dma.done.wait [#allocation4], 128  }
  0x24   :  { %88 = vsyncadd [#allocation4], 4294967168 }
  0x25   :  { %37 = vsyncpa [#allocation3], 1 }
  0x26   :  { %38 = vsyncpa [#allocation4], 1 }

</bundles_post_ra>
